<compile_context>
chip_gen: v5e
topology: v5e:2x2
jax: 0.10.0
libtpu: 0.0.40
codegen_flags: <defaults>
</compile_context>

<pallas_src>
import functools

import jax
import jax.numpy as jnp
from jax import lax
from jax.experimental import pallas as pl
from jax.experimental.pallas import tpu as pltpu


def elm_kernel(x_ref, w1_ref, b1_ref, w2_ref, b2_ref, o_ref):
    # Cast the x tile to the MXU operand dtype (cheap VPU cast, hidden behind DMA).
    x = x_ref[...].astype(w1_ref.dtype)                      # [TB, F]
    # fc1: contract over F; batch stays on the lane axis of the result.
    #   w1 [H, F] . x [TB, F]  ->  h [H, TB]   (MXU, f32 accumulate)
    h = lax.dot_general(
        w1_ref[...], x,
        dimension_numbers=(((1,), (1,)), ((), ())),
        preferred_element_type=jnp.float32,
    )
    # Bias + ReLU in f32 on the VPU (b1 is [H, 1], broadcasts over lanes).
    h = jnp.maximum(h + b1_ref[...], 0.0)
    # fc2 (out_features == 1): VPU multiply by w2 [H, 1] + XLU sublane reduce
    # over H instead of a 1-column MXU matmul.  Result is lane-dense [1, TB].
    out = jnp.sum(h * w2_ref[...], axis=0, keepdims=True)
    # b2 is a true scalar kept in SMEM.
    o_ref[...] = (out + b2_ref[0, 0]).astype(o_ref.dtype)


def _round_up(n, m):
    return ((n + m - 1) // m) * m


@functools.partial(jax.jit, static_argnames=("block_b", "compute_dtype"))
def elm_forward(x, w1, b1, w2, b2, *, block_b=512, compute_dtype=jnp.bfloat16):
    """ELM forward: relu(x @ w1.T + b1) @ w2.T + b2 (nn.Linear layouts).

    x:  [B, F] float32
    w1: [H, F] (fc1.weight), b1: [H]
    w2: [1, H] (fc2.weight), b2: [1]
    Returns [B, 1] float32.
    """
    B, F = x.shape
    H = w1.shape[0]

    # Batch tile: a multiple of 128 (lane-dense output stores), clamped so tiny
    # batches don't allocate huge VMEM buffers.  Sweep 512-2048 for large B.
    # On v7x, keep block_b <= B/2 (even tile count) so both TensorCores get
    # work, and re-derive the tile budget for its 64 MiB VMEM.
    block = min(block_b, _round_up(B, 128))
    num_tiles = pl.cdiv(B, block)
    B_pad = num_tiles * block

    # Only the MXU operands are narrowed; epilogue math stays f32 everywhere.
    w1c = w1.astype(compute_dtype)               # [H, F]
    b1c = b1.reshape(H, 1).astype(jnp.float32)   # [H, 1]
    w2c = w2.reshape(H, 1).astype(jnp.float32)   # [H, 1] (fc2 weight, column form)
    b2s = b2.reshape(1, 1).astype(jnp.float32)   # scalar -> SMEM

    cost = pl.CostEstimate(
        flops=2 * B_pad * F * H + 3 * B_pad * H,
        transcendentals=0,
        bytes_accessed=(B * F * x.dtype.itemsize
                        + H * F * jnp.dtype(compute_dtype).itemsize
                        + (2 * H + 1) * 4 + B_pad * 4),
    )

    out_lane = pl.pallas_call(
        elm_kernel,
        out_shape=jax.ShapeDtypeStruct((1, B_pad), jnp.float32),
        grid=(num_tiles,),
        in_specs=[
            # x tile straight from HBM: a new batch slice each step, double
            # buffered by Pallas.  The ragged last tile reads undefined rows
            # past B; they only affect output lanes sliced off below.
            pl.BlockSpec((block, F), lambda i: (i, 0)),
            # Weights / biases: constant block index -> DMA'd once, resident in
            # VMEM across all batch tiles.
            # TODO(synk): on v7x with large H*F, single-buffer these via
            # pipeline_mode=pl.Buffered(1); if w1 ever outgrows VMEM, add an F
            # grid axis ("arbitrary") with an f32 accumulator scratch.
            pl.BlockSpec((H, F), lambda i: (0, 0)),
            pl.BlockSpec((H, 1), lambda i: (0, 0)),
            pl.BlockSpec((H, 1), lambda i: (0, 0)),
            # b2 scalar lives in SMEM (avoids a padded (8,128) VMEM tile).
            pl.BlockSpec(memory_space=pltpu.MemorySpace.SMEM),
        ],
        # Lane-dense output slab: batch on the lane axis, width a multiple of
        # 128 -> unmasked vector stores.
        out_specs=pl.BlockSpec((1, block), lambda i: (0, i)),
        compiler_params=pltpu.CompilerParams(
            dimension_semantics=("parallel",),
        ),
        cost_estimate=cost,
    )(x, w1c, b1c, w2c, b2s)

    # Back to PyTorch's [B, 1] column.
    return out_lane[0, :B].reshape(B, 1)


def init_params(key, feature, hidden):
    # Deterministic init mimicking nn.Linear's uniform(-1/sqrt(fan_in), ...),
    # in PyTorch parameter layouts: fc1.weight [H, F], fc1.bias [H],
    # fc2.weight [1, H], fc2.bias [1].
    k1, k2, k3, k4 = jax.random.split(key, 4)
    bound1 = 1.0 / jnp.sqrt(feature)
    bound2 = 1.0 / jnp.sqrt(hidden)
    w1 = jax.random.uniform(k1, (hidden, feature), jnp.float32, -bound1, bound1)
    b1 = jax.random.uniform(k2, (hidden,), jnp.float32, -bound1, bound1)
    w2 = jax.random.uniform(k3, (1, hidden), jnp.float32, -bound2, bound2)
    b2 = jax.random.uniform(k4, (1,), jnp.float32, -bound2, bound2)
    return w1, b1, w2, b2


def elm_reference(x, w1, b1, w2, b2):
    h = jnp.maximum(x @ w1.T + b1, 0.0)
    return h @ w2.T + b2


if __name__ == "__main__":
    key = jax.random.PRNGKey(0)
    kx, kp, kx2, kp2, kx3, kp3 = jax.random.split(key, 6)

    # 1) Small case matching the module defaults (B=8, F=H=32), exact f32 path.
    batch, feature, hidden = 8, 32, 32
    x = jax.random.normal(kx, (batch, feature), jnp.float32)
    w1, b1, w2, b2 = init_params(kp, feature, hidden)
    out = elm_forward(x, w1, b1, w2, b2, compute_dtype=jnp.float32)
    jax.block_until_ready(out)
    ref = elm_reference(x, w1, b1, w2, b2)
    assert out.shape == (batch, 1)
    assert jnp.allclose(out, ref, atol=1e-4, rtol=1e-4)

    # 2) Larger case, default bf16 MXU operands (f32 accumulate + f32 epilogue).
    batch2, feature2, hidden2 = 300, 64, 128
    x2 = jax.random.normal(kx2, (batch2, feature2), jnp.float32)
    w1b, b1b, w2b, b2b = init_params(kp2, feature2, hidden2)
    out2 = elm_forward(x2, w1b, b1b, w2b, b2b)
    jax.block_until_ready(out2)
    ref2 = elm_reference(x2, w1b, b1b, w2b, b2b)
    assert out2.shape == (batch2, 1)
    assert jnp.allclose(out2, ref2, atol=3e-2, rtol=3e-2)

    # 3) Multi-tile grid + ragged last tile (no wrapper-side padding of x).
    batch3, feature3, hidden3 = 1000, 64, 128
    x3 = jax.random.normal(kx3, (batch3, feature3), jnp.float32)
    w1c, b1c, w2c, b2c = init_params(kp3, feature3, hidden3)
    out3 = elm_forward(x3, w1c, b1c, w2c, b2c, block_b=256)
    jax.block_until_ready(out3)
    ref3 = elm_reference(x3, w1c, b1c, w2c, b2c)
    assert out3.shape == (batch3, 1)
    assert jnp.allclose(out3, ref3, atol=3e-2, rtol=3e-2)

    print("KERNEL_OK")
</pallas_src>

<mosaic_0001>
module attributes {stable_mosaic.version = 11 : i64} {
  func.func @elm_kernel(%arg0: i32, %arg1: memref<128x32xf32, #tpu.memory_space<vmem>>, %arg2: memref<32x32xf32, #tpu.memory_space<vmem>>, %arg3: memref<32x1xf32, #tpu.memory_space<vmem>>, %arg4: memref<32x1xf32, #tpu.memory_space<vmem>>, %arg5: memref<1x1xf32, #tpu.memory_space<smem>>, %arg6: memref<1x128xf32, #tpu.memory_space<vmem>>) attributes {dimension_semantics = [#tpu.dimension_semantics<parallel>], iteration_bounds = array<i64: 1>, scalar_prefetch = 0 : i64, scratch_operands = 0 : i64, tpu.core_type = #tpu.core_type<tc>, window_params = [{transform_indices = @transform_0, window_bounds = array<i64: 128, 32>}, {pipeline_mode = #tpu.pipeline_mode<synchronous>, transform_indices = @transform_1, window_bounds = array<i64: 32, 32>}, {pipeline_mode = #tpu.pipeline_mode<synchronous>, transform_indices = @transform_2, window_bounds = array<i64: 32, 1>}, {pipeline_mode = #tpu.pipeline_mode<synchronous>, transform_indices = @transform_3, window_bounds = array<i64: 32, 1>}, {transform_indices = @transform_4, window_bounds = array<i64: 1, 1>}, {transform_indices = @transform_5, window_bounds = array<i64: 1, 128>}]} {
    %c0 = arith.constant 0 : index
    %c0_0 = arith.constant 0 : index
    %0 = vector.load %arg1[%c0, %c0_0] : memref<128x32xf32, #tpu.memory_space<vmem>>, vector<128x32xf32>
    %c0_1 = arith.constant 0 : index
    %c0_2 = arith.constant 0 : index
    %1 = vector.load %arg2[%c0_1, %c0_2] : memref<32x32xf32, #tpu.memory_space<vmem>>, vector<32x32xf32>
    %cst = arith.constant dense<0.000000e+00> : vector<32x128xf32>
    %2 = tpu.matmul %1, %0, %cst {dimension_numbers = #tpu.dot_dimension_numbers<[1], [1], [0], [0], [0, 0, 1, 0], [], []>} : vector<32x32xf32>, vector<128x32xf32>, vector<32x128xf32> -> vector<32x128xf32>
    %c0_3 = arith.constant 0 : index
    %c0_4 = arith.constant 0 : index
    %3 = vector.load %arg3[%c0_3, %c0_4] : memref<32x1xf32, #tpu.memory_space<vmem>>, vector<32x1xf32>
    %4 = vector.broadcast %3 : vector<32x1xf32> to vector<32x128xf32>
    %5 = arith.addf %2, %4 : vector<32x128xf32>
    %cst_5 = arith.constant 0.000000e+00 : f32
    %6 = vector.broadcast %cst_5 : f32 to vector<32x128xf32>
    %7 = arith.maximumf %5, %6 : vector<32x128xf32>
    %c0_6 = arith.constant 0 : index
    %c0_7 = arith.constant 0 : index
    %8 = vector.load %arg4[%c0_6, %c0_7] : memref<32x1xf32, #tpu.memory_space<vmem>>, vector<32x1xf32>
    %9 = vector.broadcast %8 : vector<32x1xf32> to vector<32x128xf32>
    %10 = arith.mulf %7, %9 : vector<32x128xf32>
    %cst_8 = arith.constant dense<0.000000e+00> : vector<128xf32>
    %11 = vector.multi_reduction <add>, %10, %cst_8 [0] : vector<32x128xf32> to vector<128xf32>
    %12 = vector.shape_cast %11 : vector<128xf32> to vector<1x128xf32>
    %c0_9 = arith.constant 0 : index
    %c0_10 = arith.constant 0 : index
    %13 = memref.load %arg5[%c0_9, %c0_10] : memref<1x1xf32, #tpu.memory_space<smem>>
    %14 = vector.broadcast %13 : f32 to vector<1x128xf32>
    %15 = arith.addf %12, %14 : vector<1x128xf32>
    %c0_11 = arith.constant 0 : index
    %c0_12 = arith.constant 0 : index
    %16 = vector.load %arg6[%c0_11, %c0_12] : memref<1x128xf32, #tpu.memory_space<vmem>>, vector<1x128xf32>
    tpu.vector_store %arg6[%c0_11, %c0_12], %15 {strides = array<i32>} : memref<1x128xf32, #tpu.memory_space<vmem>>, vector<1x128xf32>,
    return
  }
  func.func @transform_0(%arg0: i32) -> (i32, i32) {
    %c0_i32 = arith.constant 0 : i32
    %c0_i32_0 = arith.constant 0 : i32
    return %arg0, %c0_i32 : i32, i32
  }
  func.func @transform_1(%arg0: i32) -> (i32, i32) {
    %c0_i32 = arith.constant 0 : i32
    %c0_i32_0 = arith.constant 0 : i32
    %c0_i32_1 = arith.constant 0 : i32
    return %c0_i32, %c0_i32_0 : i32, i32
  }
  func.func @transform_2(%arg0: i32) -> (i32, i32) {
    %c0_i32 = arith.constant 0 : i32
    %c0_i32_0 = arith.constant 0 : i32
    %c0_i32_1 = arith.constant 0 : i32
    return %c0_i32, %c0_i32_0 : i32, i32
  }
  func.func @transform_3(%arg0: i32) -> (i32, i32) {
    %c0_i32 = arith.constant 0 : i32
    %c0_i32_0 = arith.constant 0 : i32
    %c0_i32_1 = arith.constant 0 : i32
    return %c0_i32, %c0_i32_0 : i32, i32
  }
  func.func @transform_4(%arg0: i32) -> (i32, i32) {
    %c0_i32 = arith.constant 0 : i32
    %c0_i32_0 = arith.constant 0 : i32
    %c0_i32_1 = arith.constant 0 : i32
    return %c0_i32, %c0_i32_0 : i32, i32
  }
  func.func @transform_5(%arg0: i32) -> (i32, i32) {
    %c0_i32 = arith.constant 0 : i32
    %c0_i32_0 = arith.constant 0 : i32
    return %c0_i32, %arg0 : i32, i32
  }
}

</mosaic_0001>

<bundles_post_ra>
// kernel: elm_forward.1
= control target key start
LH: loop header
LB: loop body
LE: loop exit
PB: predicated region body
PF: predicated region fallthrough
CT: control target
= control target key end

     0   :  { %vm65_vm0 = vcmask 261120   ;;  %v276_v7 = vmov 0   ;;  %s465_s0 = inlined_call_operand.vmem [shape: f32[8,32], index: 0, kind: input, shape index: {}]   ;;  %s466_s2 = inlined_call_operand.vmem [shape: f32[32,1], index: 2, kind: input, shape index: {}]   ;;  %s467_s3 = inlined_call_operand.vmem [shape: f32[32,1], index: 3, kind: input, shape index: {}]   ;;  %s468_s1 = inlined_call_operand.vmem [shape: f32[32,32], index: 1, kind: input, shape index: {}]   ;;  %s469_s4 = inlined_call_operand.<no memory space> [shape: f32[1,1], index: 4, kind: input, shape index: {}]   ;;  %s470_s5 = inlined_call_operand.vmem [shape: f32[1,128], index: 5, kind: output, shape index: {}]  }
   0x1   :  { %v36_v0 = vld [vmem:[%s465_s0 + $0x78] sm:$0xff]  ;;  %v35_v1 = vld [vmem:[%s465_s0 + $0x70] sm:$0xff]  ;;  %v34_v2 = vld [vmem:[%s465_s0 + $0x68] sm:$0xff]  ;;  %273 = vset.pattern.permute.xlu0 %v276_v7  ;;  %274 = vset.pattern.permute.xlu1 %v276_v7  ;;  %v197_v61 = vstv %s469_s4 }
   0x2   :  { %204 = vmatpush.xpose.msk.msra.mxu0 %vm65_vm0, %v36_v0  ;;  %224 = vmatpush.xpose.msk.msra.mxu1 %vm65_vm0, %v36_v0  ;;  %v33_v3 = vld [vmem:[%s465_s0 + $0x60] sm:$0xff]  ;;  %v32_v4 = vld [vmem:[%s465_s0 + $0x58] sm:$0xff]  ;;  %v31_v5 = vld [vmem:[%s465_s0 + $0x50] sm:$0xff] }
   0x3   :  { %225 = vmatpush.xpose.msk.msra.mxu2 %vm65_vm0, %v36_v0  ;;  %226 = vmatpush.xpose.msk.msra.mxu3 %vm65_vm0, %v36_v0  ;;  %v41_v6 = vld [vmem:[%s466_s2] sm:$0xff]  ;;  %v30_v8 = vld [vmem:[%s465_s0 + $0x48] sm:$0xff]  ;;  %v43_v9 = vld [vmem:[%s466_s2 + $0x10] sm:$0xff] }
   0x4   :  { %47 = vperm.xlu0 %273, %v41_v6   ;;  %275 = vset.pattern.permute.xlu2 %v276_v7  ;;  %v29_v10 = vld [vmem:[%s465_s0 + $0x40] sm:$0xff]  ;;  %v42_v11 = vld [vmem:[%s466_s2 + $0x8] sm:$0xff]  ;;  %v28_v12 = vld [vmem:[%s465_s0 + $0x38] sm:$0xff] }
   0x5   :  { %57 = vperm.xlu1 %274, %v43_v9   ;;  %v44_v13 = vld [vmem:[%s466_s2 + $0x18] sm:$0xff]  ;;  %v161_v14 = vld [vmem:[%s467_s3 + $0x10] sm:$0xff]  ;;  %v159_v15 = vld [vmem:[%s467_s3] sm:$0xff] }
   0x6   :  { %205 = vmatpush.xpose.msk.msra.mxu0 %vm65_vm0, %v35_v1  ;;  %227 = vmatpush.xpose.msk.msra.mxu1 %vm65_vm0, %v35_v1  ;;  %v27_v16 = vld [vmem:[%s465_s0 + $0x30] sm:$0xff]  ;;  %v162_v17 = vld [vmem:[%s467_s3 + $0x18] sm:$0xff]  ;;  %v26_v18 = vld [vmem:[%s465_s0 + $0x28] sm:$0xff] }
   0x7   :  { %228 = vmatpush.xpose.msk.msra.mxu2 %vm65_vm0, %v35_v1  ;;  %229 = vmatpush.xpose.msk.msra.mxu3 %vm65_vm0, %v35_v1  ;;  %v160_v19 = vld [vmem:[%s467_s3 + $0x8] sm:$0xff]  ;;  %v25_v20 = vld [vmem:[%s465_s0 + $0x20] sm:$0xff]  ;;  %v24_v21 = vld [vmem:[%s465_s0 + $0x18] sm:$0xff] }
   0x8   :  { %165 = vperm.xlu2 %275, %v159_v15   ;;  %v23_v22 = vld [vmem:[%s465_s0 + $0x10] sm:$0xff]  ;;  %v22_v23 = vld [vmem:[%s465_s0 + $0x8] sm:$0xff]  ;;  %v21_v24 = vld [vmem:[%s465_s0] sm:$0xff] }
   0x9   :  { %v37_v25 = vld [vmem:[%s468_s1] sm:$0xff]  ;;  %v38_v26 = vld [vmem:[%s468_s1 + $0x8] sm:$0xff]  ;;  %v39_v27 = vld [vmem:[%s468_s1 + $0x10] sm:$0xff] }
   0xa   :  { %206 = vmatpush.xpose.msk.msra.mxu0 %vm65_vm0, %v34_v2  ;;  %230 = vmatpush.xpose.msk.msra.mxu1 %vm65_vm0, %v34_v2  ;;  %v40_v28 = vld [vmem:[%s468_s1 + $0x18] sm:$0xff] }
   0xb   :  { %231 = vmatpush.xpose.msk.msra.mxu2 %vm65_vm0, %v34_v2  ;;  %232 = vmatpush.xpose.msk.msra.mxu3 %vm65_vm0, %v34_v2 }
   0xc   :  { %52 = vperm.xlu0 %273, %v42_v11  }
   0xd   :  { %62 = vperm.xlu1 %274, %v44_v13  }
   0xe   :  { %207 = vmatpush.xpose.msk.msra.mxu0 %vm65_vm0, %v33_v3  ;;  %233 = vmatpush.xpose.msk.msra.mxu1 %vm65_vm0, %v33_v3 }
   0xf   :  { %234 = vmatpush.xpose.msk.msra.mxu2 %vm65_vm0, %v33_v3  ;;  %235 = vmatpush.xpose.msk.msra.mxu3 %vm65_vm0, %v33_v3 }
  0x10   :  { %170 = vperm.xlu2 %275, %v160_v19  }
  0x12   :  { %208 = vmatpush.xpose.msk.msra.mxu0 %vm65_vm0, %v32_v4  ;;  %236 = vmatpush.xpose.msk.msra.mxu1 %vm65_vm0, %v32_v4 }
  0x13   :  { %237 = vmatpush.xpose.msk.msra.mxu2 %vm65_vm0, %v32_v4  ;;  %238 = vmatpush.xpose.msk.msra.mxu3 %vm65_vm0, %v32_v4 }
  0x14   :  { %175 = vperm.xlu0 %273, %v161_v14  }
  0x15   :  { %180 = vperm.xlu1 %274, %v162_v17  }
  0x16   :  { %209 = vmatpush.xpose.msk.msra.mxu0 %vm65_vm0, %v31_v5  ;;  %239 = vmatpush.xpose.msk.msra.mxu1 %vm65_vm0, %v31_v5 }
  0x17   :  { %240 = vmatpush.xpose.msk.msra.mxu2 %vm65_vm0, %v31_v5  ;;  %241 = vmatpush.xpose.msk.msra.mxu3 %vm65_vm0, %v31_v5 }
  0x1a   :  { %210 = vmatpush.xpose.msk.msra.mxu0 %vm65_vm0, %v30_v8  ;;  %242 = vmatpush.xpose.msk.msra.mxu1 %vm65_vm0, %v30_v8 }
  0x1b   :  { %243 = vmatpush.xpose.msk.msra.mxu2 %vm65_vm0, %v30_v8  ;;  %244 = vmatpush.xpose.msk.msra.mxu3 %vm65_vm0, %v30_v8 }
  0x1e   :  { %211 = vmatpush.xpose.msk.msra.mxu0 %vm65_vm0, %v29_v10  ;;  %245 = vmatpush.xpose.msk.msra.mxu1 %vm65_vm0, %v29_v10 }
  0x1f   :  { %246 = vmatpush.xpose.msk.msra.mxu2 %vm65_vm0, %v29_v10  ;;  %247 = vmatpush.xpose.msk.msra.mxu3 %vm65_vm0, %v29_v10 }
  0x22   :  { %212 = vmatpush.xpose.msk.msra.mxu0 %vm65_vm0, %v28_v12  ;;  %248 = vmatpush.xpose.msk.msra.mxu1 %vm65_vm0, %v28_v12 }
  0x23   :  { %249 = vmatpush.xpose.msk.msra.mxu2 %vm65_vm0, %v28_v12  ;;  %250 = vmatpush.xpose.msk.msra.mxu3 %vm65_vm0, %v28_v12 }
  0x26   :  { %213 = vmatpush.xpose.msk.msra.mxu0 %vm65_vm0, %v27_v16  ;;  %251 = vmatpush.xpose.msk.msra.mxu1 %vm65_vm0, %v27_v16 }
  0x27   :  { %252 = vmatpush.xpose.msk.msra.mxu2 %vm65_vm0, %v27_v16  ;;  %253 = vmatpush.xpose.msk.msra.mxu3 %vm65_vm0, %v27_v16 }
  0x2a   :  { %214 = vmatpush.xpose.msk.msra.mxu0 %vm65_vm0, %v26_v18  ;;  %254 = vmatpush.xpose.msk.msra.mxu1 %vm65_vm0, %v26_v18 }
  0x2b   :  { %255 = vmatpush.xpose.msk.msra.mxu2 %vm65_vm0, %v26_v18  ;;  %256 = vmatpush.xpose.msk.msra.mxu3 %vm65_vm0, %v26_v18 }
  0x2e   :  { %215 = vmatpush.xpose.msk.msra.mxu0 %vm65_vm0, %v25_v20  ;;  %257 = vmatpush.xpose.msk.msra.mxu1 %vm65_vm0, %v25_v20 }
  0x2f   :  { %258 = vmatpush.xpose.msk.msra.mxu2 %vm65_vm0, %v25_v20  ;;  %259 = vmatpush.xpose.msk.msra.mxu3 %vm65_vm0, %v25_v20 }
  0x32   :  { %216 = vmatpush.xpose.msk.msra.mxu0 %vm65_vm0, %v24_v21  ;;  %260 = vmatpush.xpose.msk.msra.mxu1 %vm65_vm0, %v24_v21 }
  0x33   :  { %261 = vmatpush.xpose.msk.msra.mxu2 %vm65_vm0, %v24_v21  ;;  %262 = vmatpush.xpose.msk.msra.mxu3 %vm65_vm0, %v24_v21 }
  0x36   :  { %217 = vmatpush.xpose.msk.msra.mxu0 %vm65_vm0, %v23_v22  ;;  %263 = vmatpush.xpose.msk.msra.mxu1 %vm65_vm0, %v23_v22 }
  0x37   :  { %264 = vmatpush.xpose.msk.msra.mxu2 %vm65_vm0, %v23_v22  ;;  %265 = vmatpush.xpose.msk.msra.mxu3 %vm65_vm0, %v23_v22 }
  0x3a   :  { %218 = vmatpush.xpose.msk.msra.mxu0 %vm65_vm0, %v22_v23  ;;  %266 = vmatpush.xpose.msk.msra.mxu1 %vm65_vm0, %v22_v23 }
  0x3b   :  { %267 = vmatpush.xpose.msk.msra.mxu2 %vm65_vm0, %v22_v23  ;;  %268 = vmatpush.xpose.msk.msra.mxu3 %vm65_vm0, %v22_v23 }
  0x3e   :  { %219 = vmatpush.xpose.msk.msra.mxu0 %vm65_vm0, %v21_v24  ;;  %269 = vmatpush.xpose.msk.msra.mxu1 %vm65_vm0, %v21_v24 }
  0x3f   :  { %270 = vmatpush.xpose.msk.msra.mxu2 %vm65_vm0, %v21_v24  ;;  %271 = vmatpush.xpose.msk.msra.mxu3 %vm65_vm0, %v21_v24 }
  0x41   :  { %220 = vmatmul.msk.f32.vlgmr.msra.gmra.mxu0 %vm65_vm0, %v37_v25  ;;  %221 = vmatmul.msk.f32.vlgmr.msra.gmra.mxu1 %vm65_vm0, %v38_v26 }
  0x42   :  { %222 = vmatmul.msk.f32.vlgmr.msra.gmra.mxu2 %vm65_vm0, %v39_v27  ;;  %223 = vmatmul.msk.f32.vlgmr.msra.gmra.mxu3 %vm65_vm0, %v40_v28 }
  0x62   :  { %v166_v31 = vpop.permute.xlu2 %165 }
  0x6a   :  { %v171_v40 = vpop.permute.xlu2 %170 }
  0x76   :  { %v48_v29 = vpop.permute.xlu0 %47 }
  0x77   :  { %v58_v30 = vpop.permute.xlu1 %57 }
  0x7e   :  { %v53_v32 = vpop.permute.xlu0 %52 }
  0x7f   :  { %v63_v37 = vpop.permute.xlu1 %62 }
  0x86   :  { %v176_v49 = vpop.permute.xlu0 %175 }
  0x87   :  { %v181_v52 = vpop.permute.xlu1 %180 }
  0xbe   :  { %v143_v33 = vpop.f32.mrf.mxu0  ;;  %v146_v34 = vpop.f32.mrf.mxu1 }
  0xbf   :  { %v144_v35 = vadd.f32 %v143_v33, %v48_v29  ;;  %v147_v36 = vadd.f32 %v146_v34, %v53_v32 }
  0xc1   :  { %v155_v38 = vmax.f32 %v144_v35, 0.0  ;;  %v156_v39 = vmax.f32 %v147_v36, 0.0 }
  0xc3   :  { %v183_v43 = vmul.f32 %v166_v31, %v155_v38  ;;  %v184_v44 = vmul.f32 %v171_v40, %v156_v39 }
  0xc5   :  { %v149_v41 = vpop.f32.mrf.mxu2  ;;  %v152_v42 = vpop.f32.mrf.mxu3  ;;  %v187_v50 = vadd.f32 %v184_v44, %v183_v43 }
  0xc6   :  { %v150_v45 = vadd.f32 %v149_v41, %v58_v30  ;;  %v153_v46 = vadd.f32 %v152_v42, %v63_v37 }
  0xc8   :  { %v157_v47 = vmax.f32 %v150_v45, 0.0  ;;  %v158_v48 = vmax.f32 %v153_v46, 0.0 }
  0xca   :  { %v185_v51 = vmul.f32 %v176_v49, %v157_v47  ;;  %v186_v54 = vmul.f32 %v181_v52, %v158_v48 }
  0xcc   :  { %v188_v53 = vadd.f32 %v187_v50, %v185_v51 }
  0xce   :  { %v189_v55 = vadd.f32 %v188_v53, %v186_v54 }
  0xd0   :  { %v190_v56 = vrot.slane %v189_v55, 4 }
  0xd2   :  { %v191_v57 = vadd.f32 %v190_v56, %v189_v55 }
  0xd4   :  { %v192_v58 = vrot.slane %v191_v57, 2 }
  0xd6   :  { %v193_v59 = vadd.f32 %v192_v58, %v191_v57 }
  0xd8   :  { %v194_v60 = vrot.slane %v193_v59, 1 }
  0xda   :  { %v195_v62 = vadd.f32 %v194_v60, %v193_v59 }
  0xdc   :  { %v198_v63 = vadd.f32 %v197_v61, %v195_v62 }
  0xde   :  { %199 = vst [vmem:[%s470_s5] sm:$0x1] %v198_v63 }

</bundles_post_ra>
